<compile_context>
chip_gen: v5e
topology: v5e:2x2
jax: 0.10.0
libtpu: 0.0.40
codegen_flags: <defaults>
</compile_context>

<pallas_src>
import jax
import jax.numpy as jnp
from jax.experimental import pallas as pl
from jax.experimental.pallas import tpu as pltpu

LANES = 128
MAX_BLOCK_ROWS = 4096          # (4096, 128) f32 = 2 MiB per block buffer
PALLAS_MIN_BATCH = 64 * 1024   # below this, a fused XLA elementwise op wins


def _dict_output_kernel(params_ref, x_ref, out1_ref, out2_ref):
    # params (SMEM, float32[6]): [w_in, b_in, w_out1, b_out1, w_out2, b_out2]
    w_in = params_ref[0]
    b_in = params_ref[1]
    w1 = params_ref[2]
    b1 = params_ref[3]
    w2 = params_ref[4]
    b2 = params_ref[5]

    # Fold the two affine layers on the (free) scalar path.
    a1 = w_in * w1
    c1 = b_in * w1 + b1
    a2 = w_in * w2
    c2 = b_in * w2 + b2

    x = x_ref[...]                      # (block_rows, 128) float32, lane-dense
    out1_ref[...] = x * a1 + c1
    out2_ref[...] = x * a2 + c2


def _row_axis_semantics():
    """CORE_PARALLEL on v7x (2 TC/chip); plain 'parallel' elsewhere."""
    try:
        kind = jax.devices()[0].device_kind.lower()
    except Exception:
        kind = ""
    if "v7" in kind:
        return (pltpu.CORE_PARALLEL,)
    return ("parallel",)


def _pallas_forward(x_flat, params):
    """x_flat: float32[B]; returns (out1, out2) each float32[B, 1]."""
    B = x_flat.shape[0]

    # ---- tail-only padding (none at all when B % 128 == 0) ---------------
    if B % LANES == 0:
        padded = B
        x_pad = x_flat
    else:
        padded = -(-B // LANES) * LANES
        x_pad = jnp.pad(x_flat, (0, padded - B))
    rows = padded // LANES
    if rows < 8:                        # only reachable via force_pallas
        new_padded = 8 * LANES
        x_pad = jnp.pad(x_pad, (0, new_padded - padded))
        padded, rows = new_padded, 8

    block_rows = min(MAX_BLOCK_ROWS, (rows // 8) * 8)   # multiple of 8, <= rows
    num_blocks = -(-rows // block_rows)                 # last block may be partial
    x2d = x_pad.reshape(rows, LANES)                    # free reshape

    blk = pl.BlockSpec((block_rows, LANES), lambda i, params_smem: (i, 0))
    total = rows * LANES

    out1_2d, out2_2d = pl.pallas_call(
        _dict_output_kernel,
        out_shape=(
            jax.ShapeDtypeStruct((rows, LANES), jnp.float32),
            jax.ShapeDtypeStruct((rows, LANES), jnp.float32),
        ),
        grid_spec=pltpu.PrefetchScalarGridSpec(
            num_scalar_prefetch=1,          # params -> SMEM
            grid=(num_blocks,),
            in_specs=[blk],
            out_specs=(blk, blk),
        ),
        compiler_params=pltpu.CompilerParams(
            dimension_semantics=_row_axis_semantics(),
        ),
        cost_estimate=pl.CostEstimate(
            flops=4 * total,                # 2 mul + 2 add per element
            transcendentals=0,
            bytes_accessed=12 * total,      # 1 read + 2 writes, f32
        ),
    )(params, x2d)

    out1 = out1_2d.reshape(-1)
    out2 = out2_2d.reshape(-1)
    if padded != B:                        # ragged: drop the tail pad
        out1 = out1[:B]
        out2 = out2[:B]
    return out1.reshape(B, 1), out2.reshape(B, 1)


def _jnp_forward(x, params):
    """Small-batch fallback (same math order as the PyTorch module)."""
    w_in, b_in, w1, b1, w2, b2 = (params[i] for i in range(6))
    h = x * w_in + b_in
    return {"out1": h * w1 + b1, "out2": h * w2 + b2}


def dict_output_model(x, params, *, force_pallas=False):
    """x: float32[B, 1]; params: float32[6] -> {'out1','out2'} float32[B, 1]."""
    B, F = x.shape
    assert F == 1, "module is Linear(1,1); feature dim must be 1"
    if not force_pallas and B < PALLAS_MIN_BATCH:
        return _jnp_forward(x, params)
    out1, out2 = _pallas_forward(x.reshape(-1), params)
    return {"out1": out1, "out2": out2}


def init_params(key):
    """Init mimicking nn.Linear(1,1): w, b ~ U(-1, 1) (bound = 1/sqrt(1) = 1)."""
    ks = jax.random.split(key, 6)
    vals = [jax.random.uniform(k, (), jnp.float32, -1.0, 1.0) for k in ks]
    # [w_in, b_in, w_out1, b_out1, w_out2, b_out2]
    return jnp.stack(vals)


def _reference(x, params):
    w_in, b_in, w1, b1, w2, b2 = [params[i] for i in range(6)]
    h = x * w_in + b_in
    return {"out1": h * w1 + b1, "out2": h * w2 + b2}


def _check(got, want):
    assert got["out1"].shape == want["out1"].shape
    assert got["out2"].shape == want["out2"].shape
    assert jnp.allclose(got["out1"], want["out1"], rtol=1e-5, atol=1e-6)
    assert jnp.allclose(got["out2"], want["out2"], rtol=1e-5, atol=1e-6)


if __name__ == "__main__":
    key = jax.random.PRNGKey(0)
    k_param, k_x1, k_x2, k_x3 = jax.random.split(key, 4)

    params = init_params(k_param)

    # Aligned fast path (B % 128 == 0): zero-copy reshape into the kernel.
    x_aligned = jax.random.normal(k_x1, (2048, 1), dtype=jnp.float32)
    out_aligned = dict_output_model(x_aligned, params, force_pallas=True)
    jax.block_until_ready(out_aligned)
    _check(out_aligned, _reference(x_aligned, params))

    # Ragged batch: tail-only pad + masked partial last block.
    x_ragged = jax.random.normal(k_x2, (1333, 1), dtype=jnp.float32)
    out_ragged = dict_output_model(x_ragged, params, force_pallas=True)
    jax.block_until_ready(out_ragged)
    _check(out_ragged, _reference(x_ragged, params))

    # Tiny batch: pure-jnp fallback path.
    x_small = jax.random.normal(k_x3, (8, 1), dtype=jnp.float32)
    out_small = dict_output_model(x_small, params)
    jax.block_until_ready(out_small)
    _check(out_small, _reference(x_small, params))

    print("KERNEL_OK")
</pallas_src>

<mosaic_0001>
module attributes {stable_mosaic.version = 11 : i64} {
  func.func @_dict_output_kernel(%arg0: i32, %arg1: memref<6xf32, #tpu.memory_space<smem>>, %arg2: memref<16x128xf32, #tpu.memory_space<vmem>>, %arg3: memref<16x128xf32, #tpu.memory_space<vmem>>, %arg4: memref<16x128xf32, #tpu.memory_space<vmem>>) attributes {dimension_semantics = [#tpu.dimension_semantics<parallel>], iteration_bounds = array<i64: 1>, scalar_prefetch = 1 : i64, scratch_operands = 0 : i64, tpu.core_type = #tpu.core_type<tc>, window_params = [{transform_indices = @transform_0, window_bounds = array<i64: 16, 128>}, {transform_indices = @transform_1, window_bounds = array<i64: 16, 128>}, {transform_indices = @transform_2, window_bounds = array<i64: 16, 128>}]} {
    %c0 = arith.constant 0 : index
    %0 = memref.load %arg1[%c0] : memref<6xf32, #tpu.memory_space<smem>>
    %c1 = arith.constant 1 : index
    %1 = memref.load %arg1[%c1] : memref<6xf32, #tpu.memory_space<smem>>
    %c2 = arith.constant 2 : index
    %2 = memref.load %arg1[%c2] : memref<6xf32, #tpu.memory_space<smem>>
    %c3 = arith.constant 3 : index
    %3 = memref.load %arg1[%c3] : memref<6xf32, #tpu.memory_space<smem>>
    %c4 = arith.constant 4 : index
    %4 = memref.load %arg1[%c4] : memref<6xf32, #tpu.memory_space<smem>>
    %c5 = arith.constant 5 : index
    %5 = memref.load %arg1[%c5] : memref<6xf32, #tpu.memory_space<smem>>
    %6 = arith.mulf %0, %2 : f32
    %7 = arith.mulf %1, %2 : f32
    %8 = arith.addf %7, %3 : f32
    %9 = arith.mulf %0, %4 : f32
    %10 = arith.mulf %1, %4 : f32
    %11 = arith.addf %10, %5 : f32
    %c0_0 = arith.constant 0 : index
    %c0_1 = arith.constant 0 : index
    %12 = vector.load %arg2[%c0_0, %c0_1] : memref<16x128xf32, #tpu.memory_space<vmem>>, vector<16x128xf32>
    %13 = vector.broadcast %6 : f32 to vector<16x128xf32>
    %14 = arith.mulf %12, %13 : vector<16x128xf32>
    %15 = vector.broadcast %8 : f32 to vector<16x128xf32>
    %16 = arith.addf %14, %15 : vector<16x128xf32>
    %c0_2 = arith.constant 0 : index
    %c0_3 = arith.constant 0 : index
    %17 = vector.load %arg3[%c0_2, %c0_3] : memref<16x128xf32, #tpu.memory_space<vmem>>, vector<16x128xf32>
    tpu.vector_store %arg3[%c0_2, %c0_3], %16 {strides = array<i32>} : memref<16x128xf32, #tpu.memory_space<vmem>>, vector<16x128xf32>,
    %18 = vector.broadcast %9 : f32 to vector<16x128xf32>
    %19 = arith.mulf %12, %18 : vector<16x128xf32>
    %20 = vector.broadcast %11 : f32 to vector<16x128xf32>
    %21 = arith.addf %19, %20 : vector<16x128xf32>
    %c0_4 = arith.constant 0 : index
    %c0_5 = arith.constant 0 : index
    %22 = vector.load %arg4[%c0_4, %c0_5] : memref<16x128xf32, #tpu.memory_space<vmem>>, vector<16x128xf32>
    tpu.vector_store %arg4[%c0_4, %c0_5], %21 {strides = array<i32>} : memref<16x128xf32, #tpu.memory_space<vmem>>, vector<16x128xf32>,
    return
  }
  func.func @transform_0(%arg0: i32, %arg1: memref<6xf32, #tpu.memory_space<smem>>) -> (i32, i32) {
    %c0_i32 = arith.constant 0 : i32
    %c0_i32_0 = arith.constant 0 : i32
    return %arg0, %c0_i32 : i32, i32
  }
  func.func @transform_1(%arg0: i32, %arg1: memref<6xf32, #tpu.memory_space<smem>>) -> (i32, i32) {
    %c0_i32 = arith.constant 0 : i32
    %c0_i32_0 = arith.constant 0 : i32
    return %arg0, %c0_i32 : i32, i32
  }
  func.func @transform_2(%arg0: i32, %arg1: memref<6xf32, #tpu.memory_space<smem>>) -> (i32, i32) {
    %c0_i32 = arith.constant 0 : i32
    %c0_i32_0 = arith.constant 0 : i32
    return %arg0, %c0_i32 : i32, i32
  }
}

</mosaic_0001>

<bundles_post_ra>
// kernel: tpu_custom_call.1
= control target key start
LH: loop header
LB: loop body
LE: loop exit
PB: predicated region body
PF: predicated region fallthrough
CT: control target
= control target key end

     0   :  { %s207_s15 = smov [#allocation3]   ;;  %s254_s0 = inlined_call_operand.hbm [shape: f32[6], index: 0, kind: input, shape index: {}]   ;;  %s255_s1 = inlined_call_operand.hbm [shape: f32[16,128], index: 1, kind: input, shape index: {}]   ;;  %s256_s2 = inlined_call_operand.hbm [shape: f32[16,128], index: 2, kind: output, shape index: {0}]   ;;  %s257_s3 = inlined_call_operand.hbm [shape: f32[16,128], index: 3, kind: output, shape index: {1}]  }
   0x1   :  { %s10_s14 = sshll.u32 %s254_s0, 4  ;;  %s11_s14 = int_to_ptr.hbm [resolvable:$true] %s10_s14 }
   0x2   :  { %13 = dma.hbm_to_smem %s11_s14, 16, %s207_s15, [#allocation2] }
   0x3   :  { %199 = dma.done.wait [#allocation2], 16 }
   0x4   :  { %200 = vsyncadd [#allocation2], 4294967280 }
   0x5   :  { %16 = sfence }
   0x6   :  { %17 = vsyncpa [#allocation5], 0 }
   0x7   :  { %18 = vsyncpa [#allocation6], 0 }
   0x8   :  { %19 = vsyncpa [#allocation9], 0  ;;  %s24_s18 = sshll.u32 %s255_s1, 4  ;;  %s208_s19 = smov [#allocation4]   ;;  %s25_s18 = int_to_ptr.hbm [resolvable:$true] %s24_s18 }
   0x9   :  { %s26_s20 = sshll.u32 %s208_s19, 4  ;;  %s209_s21 = smov 128   ;;  %s27_s20 = int_to_ptr.vmem [resolvable:$true] %s26_s20 }
   0xa   :  { %s210_s22 = smov 8  }
   0xb   :  { %32 = dma.hbm_to_vmem [thread:$0]  %s25_s18, 256, %s27_s20, [#allocation5], %s209_s21, %s209_s21, %s210_s22  }
   0xc   :  { %201 = dma.done.wait [#allocation5], 256  }
   0xd   :  { %202 = vsyncadd [#allocation5], 4294967040  ;;  %s37_s0 = sld [smem:[#allocation3]]  ;;  %v49_v0 = vld [vmem:[#allocation4] sm:$0xff]  ;;  %v50_v1 = vld [vmem:[#allocation4 + $0x8] sm:$0xff]  ;;  %s211_s5 = smov [#allocation7]  }
   0xe   :  { %s104_s23 = sld [smem:[#allocation3 + $0x1]]  ;;  %s71_s6 = sshll.u32 %s211_s5, 4  ;;  %s72_s6 = int_to_ptr.vmem [resolvable:$true] %s71_s6 }
   0xf   :  { %s105_s24 = sld [smem:[#allocation3 + $0x2]]  ;;  %s73_s9 = sshll.u32 %s256_s2, 4  ;;  %s74_s9 = int_to_ptr.hbm [resolvable:$true] %s73_s9 }
  0x10   :  { %s106_s25 = sld [smem:[#allocation3 + $0x3]]  ;;  %s212_s11 = smov [#allocation8]  }
  0x11   :  { %s107_s26 = sld [smem:[#allocation3 + $0x4]]  ;;  %s84_s12 = sshll.u32 %s212_s11, 4  ;;  %s85_s12 = int_to_ptr.vmem [resolvable:$true] %s84_s12 }
  0x12   :  { %s108_s27 = sld [smem:[#allocation3 + $0x5]]  ;;  %s86_s15 = sshll.u32 %s257_s3, 4  ;;  %s87_s15 = int_to_ptr.hbm [resolvable:$true] %s86_s15 }
  0x15   :  { %s43_s28 = smul.f32 %s105_s24, %s37_s0 }
  0x16   :  { %s44_s1 = smul.f32 %s105_s24, %s104_s23 }
  0x17   :  { %v51_v2 = vstv %s43_s28  ;;  %s46_s29 = smul.f32 %s107_s26, %s37_s0 }
  0x18   :  { %s45_s30 = sadd.f32 %s106_s25, %s44_s1  ;;  %v52_v3 = vmul.f32 %v51_v2, %v49_v0  ;;  %v53_v4 = vmul.f32 %v51_v2, %v50_v1  ;;  %s47_s4 = smul.f32 %s107_s26, %s104_s23 }
  0x19   :  { %v59_v5 = vstv %s46_s29 }
  0x1a   :  { %v54_v6 = vstv %s45_s30  ;;  %s48_s10 = sadd.f32 %s108_s27, %s47_s4  ;;  %v60_v7 = vmul.f32 %v59_v5, %v49_v0  ;;  %v61_v8 = vmul.f32 %v59_v5, %v50_v1 }
  0x1b   :  { %v55_v9 = vadd.f32 %v54_v6, %v52_v3  ;;  %v56_v10 = vadd.f32 %v54_v6, %v53_v4 }
  0x1c   :  { %v62_v11 = vstv %s48_s10 }
  0x1d   :  { %57 = vst [vmem:[#allocation7] sm:$0xff] %v55_v9  ;;  %v63_v12 = vadd.f32 %v62_v11, %v60_v7  ;;  %v64_v13 = vadd.f32 %v62_v11, %v61_v8 }
  0x1e   :  { %58 = vst [vmem:[#allocation7 + $0x8] sm:$0xff] %v56_v10 }
  0x1f   :  { %65 = vst [vmem:[#allocation8] sm:$0xff] %v63_v12  ;;  %79 = dma.vmem_to_hbm [thread:$0]  %s72_s6, 256, %s74_s9, [#allocation6], %s209_s21, %s209_s21, %s210_s22  }
  0x20   :  { %66 = vst [vmem:[#allocation8 + $0x8] sm:$0xff] %v64_v13 }
  0x21   :  { %92 = dma.vmem_to_hbm [thread:$0]  %s85_s12, 256, %s87_s15, [#allocation9], %s209_s21, %s209_s21, %s210_s22  }
  0x22   :  { %203 = dma.done.wait [#allocation6], 256  }
  0x23   :  { %204 = vsyncadd [#allocation6], 4294967040 }
  0x24   :  { %205 = dma.done.wait [#allocation9], 256  }
  0x25   :  { %206 = vsyncadd [#allocation9], 4294967040 }
  0x26   :  { %101 = vsyncpa [#allocation5], 1 }
  0x27   :  { %102 = vsyncpa [#allocation6], 1 }
  0x28   :  { %103 = vsyncpa [#allocation9], 1 }

</bundles_post_ra>
